<compile_context>
chip_gen: v7x
topology: tpu7x:2x2x1
jax: 0.10.0
libtpu: 0.0.40
codegen_flags: <defaults>
</compile_context>

<pallas_src>
import functools
import math

import jax
import jax.numpy as jnp
from jax.experimental import pallas as pl
from jax.experimental.pallas import tpu as pltpu

LANE = 128      # lane width: pad all feature dims to a multiple of this
SUBLANE = 8     # sublane granularity for the batch (second-to-last) axis


def _round_up(n: int, m: int) -> int:
    return ((n + m - 1) // m) * m


def _ffnn_fused_kernel(*refs, n_layers: int):
    """refs = (x_ref, w0, b0, w1, b1, ..., w_{L-1}, b_{L-1}, o_ref).

    Entire MLP for one batch tile. Layer loop is a static Python unroll; all
    intermediate activations live in vregs/VMEM and never touch HBM.
    """
    x_ref = refs[0]
    o_ref = refs[-1]
    wb_refs = refs[1:-1]

    h = x_ref[...].astype(jnp.float32)
    for layer in range(n_layers):
        w = wb_refs[2 * layer][...]
        b = wb_refs[2 * layer + 1][...]  # (1, Np) -> broadcasts over batch rows
        h = jnp.dot(h, w, preferred_element_type=jnp.float32) + b
        if layer != n_layers - 1:
            h = jnp.tanh(h)  # EUP transcendental
    o_ref[...] = h.astype(o_ref.dtype)


def ffnn_forward(x, params, *, block_m: int = 128):
    """Fused forward pass of the FFNN.

    x:      (M, F_in)
    params: list of (w, b) with w: (F_in_l, F_out_l), b: (F_out_l,) — unpadded.
    Returns (M, F_out_last), identical semantics to the PyTorch FFNN.forward.
    """
    M, f_in = x.shape
    n_layers = len(params)
    assert params[0][0].shape[0] == f_in
    f_out = params[-1][0].shape[1]
    dtype = x.dtype

    # --- adaptive batch tiling --------------------------------------------------
    # Small batch: one sublane-aligned tile (no grid, no wasted rows).
    # Large batch: block_m-row tiles, batch axis sharded across cores ("parallel").
    m_aligned = _round_up(M, SUBLANE)
    if m_aligned <= block_m:
        block_m = m_aligned
        m_pad = m_aligned
    else:
        m_pad = _round_up(M, block_m)

    f_in_pad = _round_up(f_in, LANE)

    # --- zero-pad everything to lane-dense / tile-aligned shapes -----------------
    x_pad = jnp.zeros((m_pad, f_in_pad), dtype=dtype).at[:M, :f_in].set(x)

    padded_params = []
    k_pad = f_in_pad
    for w, b in params:
        k, n = w.shape
        n_pad = _round_up(n, LANE)
        w_pad = jnp.zeros((k_pad, n_pad), dtype=dtype).at[:k, :n].set(w)
        b_pad = jnp.zeros((1, n_pad), dtype=dtype).at[0, :n].set(b)
        padded_params.append((w_pad, b_pad))
        k_pad = n_pad
    n_out_pad = k_pad

    # --- one fused pallas_call over batch tiles ----------------------------------
    grid = (m_pad // block_m,)

    in_specs = [pl.BlockSpec((block_m, f_in_pad), lambda i: (i, 0))]
    flat_params = []
    for w_pad, b_pad in padded_params:
        # Constant index_map -> weight-stationary: fetched once, resident in VMEM.
        in_specs.append(pl.BlockSpec(w_pad.shape, lambda i: (0, 0)))
        in_specs.append(pl.BlockSpec(b_pad.shape, lambda i: (0, 0)))
        flat_params.extend((w_pad, b_pad))

    kernel = functools.partial(_ffnn_fused_kernel, n_layers=n_layers)

    out_pad = pl.pallas_call(
        kernel,
        out_shape=jax.ShapeDtypeStruct((m_pad, n_out_pad), dtype),
        grid=grid,
        in_specs=in_specs,
        out_specs=pl.BlockSpec((block_m, n_out_pad), lambda i: (i, 0)),
        compiler_params=pltpu.CompilerParams(
            dimension_semantics=("parallel",)
        ),
    )(x_pad, *flat_params)

    return out_pad[:M, :f_out]


def init_ffnn_params(layer_sizes, key, dtype=jnp.float32):
    """Matches the PyTorch module's defaults: xavier_uniform_ weights, zeros_ biases.

    PyTorch weight shape is (out, in); we sample with that fan-in/fan-out
    convention and store the transpose (in, out) for our x @ W + b layout.
    """
    params = []
    for i in range(1, len(layer_sizes)):
        fan_in = layer_sizes[i - 1]
        fan_out = layer_sizes[i]
        key, wkey = jax.random.split(key)
        a = math.sqrt(6.0 / (fan_in + fan_out))  # xavier_uniform bound
        w = jax.random.uniform(
            wkey, (fan_in, fan_out), minval=-a, maxval=a, dtype=dtype
        )
        b = jnp.zeros((fan_out,), dtype=dtype)
        params.append((w, b))
    return params


def ffnn_reference(x, params):
    """Pure-JAX reference for correctness checking."""
    n_layers = len(params)
    h = x
    for idx, (w, b) in enumerate(params):
        h = h @ w + b
        if idx != n_layers - 1:
            h = jnp.tanh(h)
    return h


if __name__ == "__main__":
    key = jax.random.PRNGKey(0)
    key, xkey, pkey = jax.random.split(key, 3)

    # Small FFNN: 4 -> 32 -> 32 -> 2; batch = 200 (exercises batch padding logic).
    layer_sizes = [4, 32, 32, 2]
    batch = 200
    x = jax.random.normal(xkey, (batch, layer_sizes[0]), dtype=jnp.float32)

    params = init_ffnn_params(layer_sizes, pkey, dtype=jnp.float32)

    fwd = jax.jit(functools.partial(ffnn_forward, block_m=128))
    out = jax.block_until_ready(fwd(x, params))

    ref = ffnn_reference(x, params)
    assert out.shape == (batch, layer_sizes[-1]), out.shape
    assert jnp.allclose(out, ref, atol=1e-5, rtol=1e-5), "mismatch vs reference"

    # Also exercise the multi-tile ("parallel" grid) path with a larger batch.
    xl = jax.random.normal(key, (1024, layer_sizes[0]), dtype=jnp.float32)
    out_l = jax.block_until_ready(fwd(xl, params))
    assert jnp.allclose(out_l, ffnn_reference(xl, params), atol=1e-5, rtol=1e-5)

    print("KERNEL_OK")
</pallas_src>

<mosaic_0001>
module attributes {stable_mosaic.version = 11 : i64} {
  func.func @_ffnn_fused_kernel(%arg0: i32, %arg1: memref<128x128xf32, #tpu.memory_space<vmem>>, %arg2: memref<128x128xf32, #tpu.memory_space<vmem>>, %arg3: memref<1x128xf32, #tpu.memory_space<vmem>>, %arg4: memref<128x128xf32, #tpu.memory_space<vmem>>, %arg5: memref<1x128xf32, #tpu.memory_space<vmem>>, %arg6: memref<128x128xf32, #tpu.memory_space<vmem>>, %arg7: memref<1x128xf32, #tpu.memory_space<vmem>>, %arg8: memref<128x128xf32, #tpu.memory_space<vmem>>) attributes {dimension_semantics = [#tpu.dimension_semantics<parallel>], iteration_bounds = array<i64: 2>, scalar_prefetch = 0 : i64, scratch_operands = 0 : i64, tpu.core_type = #tpu.core_type<tc>, window_params = [{transform_indices = @transform_0, window_bounds = array<i64: 128, 128>}, {pipeline_mode = #tpu.pipeline_mode<synchronous>, transform_indices = @transform_1, window_bounds = array<i64: 128, 128>}, {pipeline_mode = #tpu.pipeline_mode<synchronous>, transform_indices = @transform_2, window_bounds = array<i64: 1, 128>}, {pipeline_mode = #tpu.pipeline_mode<synchronous>, transform_indices = @transform_3, window_bounds = array<i64: 128, 128>}, {pipeline_mode = #tpu.pipeline_mode<synchronous>, transform_indices = @transform_4, window_bounds = array<i64: 1, 128>}, {pipeline_mode = #tpu.pipeline_mode<synchronous>, transform_indices = @transform_5, window_bounds = array<i64: 128, 128>}, {pipeline_mode = #tpu.pipeline_mode<synchronous>, transform_indices = @transform_6, window_bounds = array<i64: 1, 128>}, {transform_indices = @transform_7, window_bounds = array<i64: 128, 128>}]} {
    %c0 = arith.constant 0 : index
    %c0_0 = arith.constant 0 : index
    %0 = vector.load %arg1[%c0, %c0_0] : memref<128x128xf32, #tpu.memory_space<vmem>>, vector<128x128xf32>
    %c0_1 = arith.constant 0 : index
    %c0_2 = arith.constant 0 : index
    %1 = vector.load %arg2[%c0_1, %c0_2] : memref<128x128xf32, #tpu.memory_space<vmem>>, vector<128x128xf32>
    %c0_3 = arith.constant 0 : index
    %c0_4 = arith.constant 0 : index
    %2 = vector.load %arg3[%c0_3, %c0_4] : memref<1x128xf32, #tpu.memory_space<vmem>>, vector<1x128xf32>
    %cst = arith.constant dense<0.000000e+00> : vector<128x128xf32>
    %3 = tpu.matmul %0, %1, %cst {dimension_numbers = #tpu.dot_dimension_numbers<[1], [0], [0], [1], [0, 0, 1, 1], [], []>} : vector<128x128xf32>, vector<128x128xf32>, vector<128x128xf32> -> vector<128x128xf32>
    %4 = vector.broadcast %2 : vector<1x128xf32> to vector<128x128xf32>
    %5 = arith.addf %3, %4 : vector<128x128xf32>
    %6 = math.tanh %5 : vector<128x128xf32>
    %c0_5 = arith.constant 0 : index
    %c0_6 = arith.constant 0 : index
    %7 = vector.load %arg4[%c0_5, %c0_6] : memref<128x128xf32, #tpu.memory_space<vmem>>, vector<128x128xf32>
    %c0_7 = arith.constant 0 : index
    %c0_8 = arith.constant 0 : index
    %8 = vector.load %arg5[%c0_7, %c0_8] : memref<1x128xf32, #tpu.memory_space<vmem>>, vector<1x128xf32>
    %cst_9 = arith.constant dense<0.000000e+00> : vector<128x128xf32>
    %9 = tpu.matmul %6, %7, %cst_9 {dimension_numbers = #tpu.dot_dimension_numbers<[1], [0], [0], [1], [0, 0, 1, 1], [], []>} : vector<128x128xf32>, vector<128x128xf32>, vector<128x128xf32> -> vector<128x128xf32>
    %10 = vector.broadcast %8 : vector<1x128xf32> to vector<128x128xf32>
    %11 = arith.addf %9, %10 : vector<128x128xf32>
    %12 = math.tanh %11 : vector<128x128xf32>
    %c0_10 = arith.constant 0 : index
    %c0_11 = arith.constant 0 : index
    %13 = vector.load %arg6[%c0_10, %c0_11] : memref<128x128xf32, #tpu.memory_space<vmem>>, vector<128x128xf32>
    %c0_12 = arith.constant 0 : index
    %c0_13 = arith.constant 0 : index
    %14 = vector.load %arg7[%c0_12, %c0_13] : memref<1x128xf32, #tpu.memory_space<vmem>>, vector<1x128xf32>
    %cst_14 = arith.constant dense<0.000000e+00> : vector<128x128xf32>
    %15 = tpu.matmul %12, %13, %cst_14 {dimension_numbers = #tpu.dot_dimension_numbers<[1], [0], [0], [1], [0, 0, 1, 1], [], []>} : vector<128x128xf32>, vector<128x128xf32>, vector<128x128xf32> -> vector<128x128xf32>
    %16 = vector.broadcast %14 : vector<1x128xf32> to vector<128x128xf32>
    %17 = arith.addf %15, %16 : vector<128x128xf32>
    %c0_15 = arith.constant 0 : index
    %c0_16 = arith.constant 0 : index
    %18 = vector.load %arg8[%c0_15, %c0_16] : memref<128x128xf32, #tpu.memory_space<vmem>>, vector<128x128xf32>
    tpu.vector_store %arg8[%c0_15, %c0_16], %17 {strides = array<i32>} : memref<128x128xf32, #tpu.memory_space<vmem>>, vector<128x128xf32>,
    return
  }
  func.func @transform_0(%arg0: i32) -> (i32, i32) {
    %c0_i32 = arith.constant 0 : i32
    %c0_i32_0 = arith.constant 0 : i32
    return %arg0, %c0_i32 : i32, i32
  }
  func.func @transform_1(%arg0: i32) -> (i32, i32) {
    %c0_i32 = arith.constant 0 : i32
    %c0_i32_0 = arith.constant 0 : i32
    %c0_i32_1 = arith.constant 0 : i32
    return %c0_i32, %c0_i32_0 : i32, i32
  }
  func.func @transform_2(%arg0: i32) -> (i32, i32) {
    %c0_i32 = arith.constant 0 : i32
    %c0_i32_0 = arith.constant 0 : i32
    %c0_i32_1 = arith.constant 0 : i32
    return %c0_i32, %c0_i32_0 : i32, i32
  }
  func.func @transform_3(%arg0: i32) -> (i32, i32) {
    %c0_i32 = arith.constant 0 : i32
    %c0_i32_0 = arith.constant 0 : i32
    %c0_i32_1 = arith.constant 0 : i32
    return %c0_i32, %c0_i32_0 : i32, i32
  }
  func.func @transform_4(%arg0: i32) -> (i32, i32) {
    %c0_i32 = arith.constant 0 : i32
    %c0_i32_0 = arith.constant 0 : i32
    %c0_i32_1 = arith.constant 0 : i32
    return %c0_i32, %c0_i32_0 : i32, i32
  }
  func.func @transform_5(%arg0: i32) -> (i32, i32) {
    %c0_i32 = arith.constant 0 : i32
    %c0_i32_0 = arith.constant 0 : i32
    %c0_i32_1 = arith.constant 0 : i32
    return %c0_i32, %c0_i32_0 : i32, i32
  }
  func.func @transform_6(%arg0: i32) -> (i32, i32) {
    %c0_i32 = arith.constant 0 : i32
    %c0_i32_0 = arith.constant 0 : i32
    %c0_i32_1 = arith.constant 0 : i32
    return %c0_i32, %c0_i32_0 : i32, i32
  }
  func.func @transform_7(%arg0: i32) -> (i32, i32) {
    %c0_i32 = arith.constant 0 : i32
    %c0_i32_0 = arith.constant 0 : i32
    return %arg0, %c0_i32 : i32, i32
  }
}

</mosaic_0001>

<bundles_post_ra>
// kernel: ffnn_forward.1
= control target key start
LH: loop header
LB: loop body
LE: loop exit
PB: predicated region body
PF: predicated region fallthrough
CT: control target
= control target key end

     0   :  { %s1416_s24 = smov 0   ;;  %s1677_s0 = inlined_call_operand.vmem [shape: f32[256,128], index: 0, kind: input, shape index: {}]   ;;  %s1678_s1 = inlined_call_operand.vmem [shape: f32[128,128], index: 1, kind: input, shape index: {}]   ;;  %s1679_s2 = inlined_call_operand.vmem [shape: f32[1,128], index: 2, kind: input, shape index: {}]   ;;  %s1680_s3 = inlined_call_operand.vmem [shape: f32[128,128], index: 3, kind: input, shape index: {}]   ;;  %s1681_s4 = inlined_call_operand.vmem [shape: f32[1,128], index: 4, kind: input, shape index: {}]   ;;  %s1682_s5 = inlined_call_operand.vmem [shape: f32[128,128], index: 5, kind: input, shape index: {}]   ;;  %s1683_s6 = inlined_call_operand.vmem [shape: f32[1,128], index: 6, kind: input, shape index: {}]   ;;  %s1684_s7 = inlined_call_operand.vmem [shape: f32[256,128], index: 7, kind: output, shape index: {}]  }
   0x1 LB: > { %s906_s25 = sadd.s32 4294967295, %s1374_s24   ;;  %p910_p0 = scmp.ge.s32.totalorder %s1374_s24, 1  ;;  %s1374_s24 = sphi %s1416_s24, %s17_s24  }
   0x2   : > { %p238_p1 = scmp.lt.s32.totalorder %s1374_s24, 3 }
   0x4   : > { %p239_p2 = pnand %p910_p0, %p238_p1 }
   0x5   : > { %v298_v0 = vld [vmem:[%s1678_s1] sm:$0xff] (!%p239_p2)  ;;  %v299_v1 = vld [vmem:[%s1678_s1 + $0x8] sm:$0xff] (!%p239_p2)  ;;  %v300_v2 = vld [vmem:[%s1678_s1 + $0x10] sm:$0xff] (!%p239_p2)  ;;  %s911_s9 = sshll.u32 (!%p239_p2), %s906_s25, 4 }
   0x6   : > { %242 = sbr.rel (%p239_p2) target bundleno = 738 (0x2e2), region = 48  ;;  %v1184_v3 = vpack.c.bf16 (!%p239_p2), %v299_v1, %v298_v0  ;;  %v301_v4 = vld [vmem:[%s1678_s1 + $0x18] sm:$0xff] (!%p239_p2)  ;;  %p271_p3 = scmp.lt.s32.totalorder (!%p239_p2), %s911_s9, 31  ;;  %v302_v6 = vld [vmem:[%s1678_s1 + $0x20] sm:$0xff] (!%p239_p2)  ;;  %v303_v7 = vld [vmem:[%s1678_s1 + $0x28] sm:$0xff] (!%p239_p2) }
   0x7   : > { %v1188_v5 = vpack.c.bf16 (!%p239_p2), %v301_v4, %v300_v2  ;;  %v1192_v8 = vpack.c.bf16 (!%p239_p2), %v303_v7, %v302_v6  ;;  %v304_v9 = vld [vmem:[%s1678_s1 + $0x30] sm:$0xff] (!%p239_p2)  ;;  %v482_v10 = vld [vmem:[%s1680_s3] sm:$0xff] (!%p239_p2)  ;;  %v483_v11 = vld [vmem:[%s1680_s3 + $0x8] sm:$0xff] (!%p239_p2) }
   0x8   : > { %1185 = vmatprep.subr.bf16.mxu0 (!%p239_p2), %v1184_v3  ;;  %v305_v12 = vld [vmem:[%s1678_s1 + $0x38] sm:$0xff] (!%p239_p2)  ;;  %v1216_v13 = vpack.c.bf16 (!%p239_p2), %v483_v11, %v482_v10  ;;  %v484_v14 = vld [vmem:[%s1680_s3 + $0x10] sm:$0xff] (!%p239_p2)  ;;  %v306_v19 = vld [vmem:[%s1678_s1 + $0x40] sm:$0xff] (!%p239_p2) }
   0x9   : > { %1187 = vmatpush3.bf16.msra.mxu0 (!%p239_p2), %v1184_v3  ;;  %v485_v15 = vld [vmem:[%s1680_s3 + $0x18] sm:$0xff] (!%p239_p2)  ;;  %v1196_v18 = vpack.c.bf16 (!%p239_p2), %v305_v12, %v304_v9  ;;  %v307_v20 = vld [vmem:[%s1678_s1 + $0x48] sm:$0xff] (!%p239_p2)  ;;  %v486_v21 = vld [vmem:[%s1680_s3 + $0x20] sm:$0xff] (!%p239_p2) }
   0xa   : > { %1189 = vmatprep.subr.bf16.mxu0 (!%p239_p2), %v1188_v5  ;;  %v1220_v17 = vpack.c.bf16 (!%p239_p2), %v485_v15, %v484_v14  ;;  %1217 = vmatprep.subr.bf16.mxu1 (!%p239_p2), %v1216_v13  ;;  %v487_v22 = vld [vmem:[%s1680_s3 + $0x28] sm:$0xff] (!%p239_p2)  ;;  %v488_v23 = vld [vmem:[%s1680_s3 + $0x30] sm:$0xff] (!%p239_p2)  ;;  %v1200_v24 = vpack.c.bf16 (!%p239_p2), %v307_v20, %v306_v19  ;;  %v489_v26 = vld [vmem:[%s1680_s3 + $0x38] sm:$0xff] (!%p239_p2) }
   0xb   : > { %1219 = vmatpush3.bf16.msra.mxu1 (!%p239_p2), %v1216_v13  ;;  %v1224_v25 = vpack.c.bf16 (!%p239_p2), %v487_v22, %v486_v21  ;;  %v308_v27 = vld [vmem:[%s1678_s1 + $0x50] sm:$0xff] (!%p239_p2)  ;;  %v309_v28 = vld [vmem:[%s1678_s1 + $0x58] sm:$0xff] (!%p239_p2)  ;;  %v1228_v29 = vpack.c.bf16 (!%p239_p2), %v489_v26, %v488_v23  ;;  %v310_v31 = vld [vmem:[%s1678_s1 + $0x60] sm:$0xff] (!%p239_p2) }
   0xc   : > { %1221 = vmatprep.subr.bf16.mxu1 (!%p239_p2), %v1220_v17  ;;  %v1204_v30 = vpack.c.bf16 (!%p239_p2), %v309_v28, %v308_v27  ;;  %v311_v32 = vld [vmem:[%s1678_s1 + $0x68] sm:$0xff] (!%p239_p2)  ;;  %v312_v34 = vld [vmem:[%s1678_s1 + $0x70] sm:$0xff] (!%p239_p2)  ;;  %v313_v35 = vld [vmem:[%s1678_s1 + $0x78] sm:$0xff] (!%p239_p2) }
   0xd   : > { %s1686_s9 = smov (!%p271_p3, %s911_s9), 31  ;;  %1191 = vmatpush3.bf16.msra.mxu0 %v1188_v5  ;;  %v1208_v33 = vpack.c.bf16 %v311_v32, %v310_v31  ;;  %v1212_v36 = vpack.c.bf16 %v313_v35, %v312_v34  ;;  %v490_v52 = vld [vmem:[%s1680_s3 + $0x40] sm:$0xff]  ;;  %v491_v53 = vld [vmem:[%s1680_s3 + $0x48] sm:$0xff]  ;;  %v492_v55 = vld [vmem:[%s1680_s3 + $0x50] sm:$0xff] }
   0xe   : > { %s912_s18 = sshll.u32 %s1686_s9, 3  ;;  %1193 = vmatprep.subr.bf16.mxu0 %v1192_v8  ;;  %v1232_v54 = vpack.c.bf16 %v491_v53, %v490_v52  ;;  %v493_v56 = vld [vmem:[%s1680_s3 + $0x58] sm:$0xff]  ;;  %v494_v58 = vld [vmem:[%s1680_s3 + $0x60] sm:$0xff]  ;;  %v495_v59 = vld [vmem:[%s1680_s3 + $0x68] sm:$0xff] }
   0xf   : > { %s1462_s28 = scalar_lea.vmem %s1677_s0, %s912_s18  ;;  %1223 = vmatpush3.bf16.msra.mxu1 %v1220_v17  ;;  %v1236_v57 = vpack.c.bf16 %v493_v56, %v492_v55  ;;  %v1240_v60 = vpack.c.bf16 %v495_v59, %v494_v58  ;;  %v496_v61 = vld [vmem:[%s1680_s3 + $0x70] sm:$0xff]  ;;  %v497_v62 = vld [vmem:[%s1680_s3 + $0x78] sm:$0xff]  ;;  %v666_v0 = vld [vmem:[%s1682_s5] sm:$0xff]  ;;  %s1656_s12 = scalar_lea.vmem %s1684_s7, %s912_s18 }
  0x10   : > { %v282_v16 = vld [vmem:[%s1462_s28] sm:$0xff]  ;;  %1225 = vmatprep.subr.bf16.mxu1 %v1224_v25  ;;  %v283_v37 = vld [vmem:[%s1462_s28 + $0x8] sm:$0xff]  ;;  %v284_v38 = vld [vmem:[%s1462_s28 + $0x10] sm:$0xff]  ;;  %v1244_v63 = vpack.c.bf16 %v497_v62, %v496_v61 }
  0x11   : > { %1048 = vmatprep.mubr.f32.mxu0 %v282_v16  ;;  %1195 = vmatpush3.bf16.msra.mxu0 %v1192_v8  ;;  %v285_v39 = vld [vmem:[%s1462_s28 + $0x18] sm:$0xff]  ;;  %v286_v40 = vld [vmem:[%s1462_s28 + $0x20] sm:$0xff]  ;;  %v287_v41 = vld [vmem:[%s1462_s28 + $0x28] sm:$0xff] }
  0x12   : > { %1197 = vmatprep.subr.bf16.mxu0 %v1196_v18  ;;  %v288_v42 = vld [vmem:[%s1462_s28 + $0x30] sm:$0xff]  ;;  %v289_v43 = vld [vmem:[%s1462_s28 + $0x38] sm:$0xff]  ;;  %v290_v44 = vld [vmem:[%s1462_s28 + $0x40] sm:$0xff] }
  0x13   : > { %1227 = vmatpush3.bf16.msra.mxu1 %v1224_v25  ;;  %v291_v45 = vld [vmem:[%s1462_s28 + $0x48] sm:$0xff]  ;;  %v292_v46 = vld [vmem:[%s1462_s28 + $0x50] sm:$0xff]  ;;  %v293_v47 = vld [vmem:[%s1462_s28 + $0x58] sm:$0xff] }
  0x14   : > { %1229 = vmatprep.subr.bf16.mxu1 %v1228_v29  ;;  %v294_v48 = vld [vmem:[%s1462_s28 + $0x60] sm:$0xff]  ;;  %v295_v49 = vld [vmem:[%s1462_s28 + $0x68] sm:$0xff]  ;;  %v296_v50 = vld [vmem:[%s1462_s28 + $0x70] sm:$0xff] }
  0x15   : > { %1199 = vmatpush3.bf16.msra.mxu0 %v1196_v18  ;;  %v297_v51 = vld [vmem:[%s1462_s28 + $0x78] sm:$0xff]  ;;  %v667_v1 = vld [vmem:[%s1682_s5 + $0x8] sm:$0xff]  ;;  %v668_v2 = vld [vmem:[%s1682_s5 + $0x10] sm:$0xff] }
  0x16   : > { %1201 = vmatprep.subr.bf16.mxu0 %v1200_v24  ;;  %v1248_v3 = vpack.c.bf16 %v667_v1, %v666_v0  ;;  %v669_v4 = vld [vmem:[%s1682_s5 + $0x18] sm:$0xff]  ;;  %v670_v6 = vld [vmem:[%s1682_s5 + $0x20] sm:$0xff]  ;;  %v671_v7 = vld [vmem:[%s1682_s5 + $0x28] sm:$0xff] }
  0x17   : > { %1231 = vmatpush3.bf16.msra.mxu1 %v1228_v29  ;;  %v1252_v5 = vpack.c.bf16 %v669_v4, %v668_v2  ;;  %v1564_v8 = vpack.c.bf16 %v671_v7, %v670_v6  ;;  %v672_v9 = vld [vmem:[%s1682_s5 + $0x30] sm:$0xff]  ;;  %v673_v10 = vld [vmem:[%s1682_s5 + $0x38] sm:$0xff]  ;;  %v1581_v12 = vld [vmem:[%s1679_s2] ss:$0 sm:$0xff] }
  0x18   : > { %1233 = vmatprep.subr.bf16.mxu1 %v1232_v54  ;;  %v1573_v11 = vpack.c.bf16 %v673_v10, %v672_v9  ;;  %v674_v61 = vld [vmem:[%s1682_s5 + $0x40] sm:$0xff]  ;;  %v675_v62 = vld [vmem:[%s1682_s5 + $0x48] sm:$0xff]  ;;  %v676_v0 = vld [vmem:[%s1682_s5 + $0x50] sm:$0xff] }
  0x19   : > { %1203 = vmatpush3.bf16.msra.mxu0 %v1200_v24  ;;  %v677_v1 = vld [vmem:[%s1682_s5 + $0x58] sm:$0xff]  ;;  %v679_v4 = vld [vmem:[%s1682_s5 + $0x68] sm:$0xff]  ;;  %v680_v6 = vld [vmem:[%s1682_s5 + $0x70] sm:$0xff] }
  0x1a   : > { %1205 = vmatprep.subr.bf16.mxu0 %v1204_v30  ;;  %v1268_v2 = vpack.c.bf16 %v677_v1, %v676_v0  ;;  %v681_v7 = vld [vmem:[%s1682_s5 + $0x78] sm:$0xff]  ;;  %v1630_v9 = vld [vmem:[%s1681_s4] ss:$0 sm:$0xff] }
  0x1b   : > { %1235 = vmatpush3.bf16.msra.mxu1 %v1232_v54 }
  0x1c   : > { %1237 = vmatprep.subr.bf16.mxu1 %v1236_v57 }
  0x1d   : > { %1207 = vmatpush3.bf16.msra.mxu0 %v1204_v30 }
  0x1e   : > { %1209 = vmatprep.subr.bf16.mxu0 %v1208_v33 }
  0x1f   : > { %1239 = vmatpush3.bf16.msra.mxu1 %v1236_v57 }
  0x20   : > { %1241 = vmatprep.subr.bf16.mxu1 %v1240_v60 }
  0x21   : > { %1211 = vmatpush3.bf16.msra.mxu0 %v1208_v33 }
  0x22   : > { %1213 = vmatprep.subr.bf16.mxu0 %v1212_v36 }
  0x23   : > { %1243 = vmatpush3.bf16.msra.mxu1 %v1240_v60 }
  0x24   : > { %1245 = vmatprep.subr.bf16.mxu1 %v1244_v63 }
  0x25   : > { %1215 = vmatpush3.bf16.msra.mxu0 %v1212_v36 }
  0x26   : > { %1249 = vmatprep.subr.bf16.mxu0 %v1248_v3 }
  0x27   : > { %1247 = vmatpush3.bf16.msra.mxu1 %v1244_v63  ;;  %v1264_v63 = vpack.c.bf16 %v675_v62, %v674_v61 }
  0x28   : > { %1049 = vmatmul.mubr.f32.vlgmr.msra.gmra.mrb[0].mxu0 %v283_v37  ;;  %1280 = vmatprep.subr.bf16.mxu1 %v1248_v3 }
  0x29   : > { %1051 = vmatprep.mubr.f32.mxu0 %v284_v38  ;;  %1251 = vmatpush3.bf16.msra.mxu0 %v1248_v3 }
  0x2a   : > { %1253 = vmatprep.subr.bf16.mxu0 %v1252_v5 }
  0x2c   : > { %1052 = vmatmul.mubr.f32.gmra.mrb[2].mxu0 %v285_v39 }
  0x2d   : > { %1054 = vmatprep.mubr.f32.mxu0 %v286_v40  ;;  %1255 = vmatpush3.bf16.msra.mxu0 %v1252_v5 }
  0x2e   : > { %1257 = vmatprep.subr.bf16.mxu0 %v1564_v8 }
  0x30   : > { %1055 = vmatmul.mubr.f32.gmra.mrb[4].mxu0 %v287_v41 }
  0x31   : > { %1057 = vmatprep.mubr.f32.mxu0 %v288_v42  ;;  %1259 = vmatpush3.bf16.msra.mxu0 %v1564_v8 }
  0x32   : > { %1261 = vmatprep.subr.bf16.mxu0 %v1573_v11 }
  0x34   : > { %1058 = vmatmul.mubr.f32.gmra.mrb[6].mxu0 %v289_v43 }
  0x35   : > { %1060 = vmatprep.mubr.f32.mxu0 %v290_v44  ;;  %1263 = vmatpush3.bf16.msra.mxu0 %v1573_v11 }
  0x36   : > { %1265 = vmatprep.subr.bf16.mxu0 %v1264_v63 }
  0x38   : > { %1061 = vmatmul.mubr.f32.gmra.mrb[8].mxu0 %v291_v45 }
  0x39   : > { %1063 = vmatprep.mubr.f32.mxu0 %v292_v46  ;;  %1267 = vmatpush3.bf16.msra.mxu0 %v1264_v63 }
  0x3a   : > { %1269 = vmatprep.subr.bf16.mxu0 %v1268_v2 }
  0x3c   : > { %1064 = vmatmul.mubr.f32.gmra.mrb[10].mxu0 %v293_v47 }
  0x3d   : > { %1066 = vmatprep.mubr.f32.mxu0 %v294_v48  ;;  %1271 = vmatpush3.bf16.msra.mxu0 %v1268_v2 }
  0x40   : > { %1067 = vmatmul.mubr.f32.gmra.mrb[12].mxu0 %v295_v49 }
  0x41   : > { %1069 = vmatprep.mubr.f32.mxu0 %v296_v50 }
  0x44   : > { %1070 = vmatmul.mubr.f32.gmra.mrb[14].mxu0 %v297_v51 }
  0xfb   : > { %v1050_v13 = vpop.f32.mrb[0].mxu0 }
  0xfc   : > { %v393_v14 = vadd.f32 %v1050_v13, %v1581_v12  ;;  %v387_v15 = vpop.f32.mrb[1].mxu0 }
  0xfd   : > { %v388_v16 = vadd.f32 %v1581_v12, %v387_v15 }
  0xff   : > { %1304 = vtanh.f32 %v388_v16  ;;  %v1053_v17 = vpop.f32.mrb[2].mxu0 }
 0x100   : > { %1306 = vtanh.f32 %v393_v14  ;;  %v403_v18 = vadd.f32 %v1053_v17, %v1581_v12  ;;  %v397_v19 = vpop.f32.mrb[3].mxu0 }
 0x101   : > { %v398_v20 = vadd.f32 %v1581_v12, %v397_v19 }
 0x103   : > { %1308 = vtanh.f32 %v398_v20  ;;  %v1056_v21 = vpop.f32.mrb[4].mxu0 }
 0x104   : > { %1310 = vtanh.f32 %v403_v18  ;;  %v413_v22 = vadd.f32 %v1056_v21, %v1581_v12  ;;  %v407_v23 = vpop.f32.mrb[5].mxu0 }
 0x105   : > { %v408_v24 = vadd.f32 %v1581_v12, %v407_v23 }
 0x107   : > { %1312 = vtanh.f32 %v408_v24  ;;  %v1059_v25 = vpop.f32.mrb[6].mxu0 }
 0x108   : > { %1314 = vtanh.f32 %v413_v22  ;;  %v423_v26 = vadd.f32 %v1059_v25, %v1581_v12  ;;  %v417_v27 = vpop.f32.mrb[7].mxu0 }
 0x109   : > { %v1305_v28 = vpop.eup %1304  ;;  %v418_v29 = vadd.f32 %v1581_v12, %v417_v27 }
 0x10a   : > { %v1307_v30 = vpop.eup %1306  ;;  %1104 = vmatprep.mubr.f32.mxu1 %v1305_v28 }
 0x10b   : > { %1316 = vtanh.f32 %v418_v29  ;;  %v1062_v31 = vpop.f32.mrb[8].mxu0  ;;  %1105 = vmatmul.mubr.f32.vlgmr.msra.gmra.mrb[0].mxu1 %v1307_v30 }
 0x10c   : > { %1318 = vtanh.f32 %v423_v26  ;;  %v433_v32 = vadd.f32 %v1062_v31, %v1581_v12  ;;  %v427_v33 = vpop.f32.mrb[9].mxu0  ;;  %1288 = vmatpush3.bf16.msra.mxu1 %v1248_v3  ;;  %v678_v3 = vld [vmem:[%s1682_s5 + $0x60] sm:$0xff] }
 0x10d   : > { %v1309_v34 = vpop.eup %1308  ;;  %v428_v35 = vadd.f32 %v1581_v12, %v427_v33  ;;  %1281 = vmatprep.subr.bf16.mxu1 %v1252_v5 }
 0x10e   : > { %v1311_v36 = vpop.eup %1310  ;;  %1107 = vmatprep.mubr.f32.mxu1 %v1309_v34 }
 0x10f   : > { %1320 = vtanh.f32 %v428_v35  ;;  %v1065_v37 = vpop.f32.mrb[10].mxu0  ;;  %1108 = vmatmul.mubr.f32.gmra.mrb[2].mxu1 %v1311_v36 }
 0x110   : > { %1322 = vtanh.f32 %v433_v32  ;;  %v443_v38 = vadd.f32 %v1065_v37, %v1581_v12  ;;  %v437_v39 = vpop.f32.mrb[11].mxu0  ;;  %1289 = vmatpush3.bf16.msra.mxu1 %v1252_v5  ;;  %v1272_v5 = vpack.c.bf16 %v679_v4, %v678_v3 }
 0x111   : > { %v1313_v40 = vpop.eup %1312  ;;  %v438_v41 = vadd.f32 %v1581_v12, %v437_v39  ;;  %1282 = vmatprep.subr.bf16.mxu1 %v1564_v8 }
 0x112   : > { %v1315_v42 = vpop.eup %1314  ;;  %1110 = vmatprep.mubr.f32.mxu1 %v1313_v40  ;;  %1273 = vmatprep.subr.bf16.mxu0 %v1272_v5 }
 0x113   : > { %1324 = vtanh.f32 %v438_v41  ;;  %v1068_v43 = vpop.f32.mrb[12].mxu0  ;;  %1111 = vmatmul.mubr.f32.gmra.mrb[4].mxu1 %v1315_v42  ;;  %1275 = vmatpush3.bf16.msra.mxu0 %v1272_v5 }
 0x114   : > { %1326 = vtanh.f32 %v443_v38  ;;  %v453_v44 = vadd.f32 %v1068_v43, %v1581_v12  ;;  %v447_v45 = vpop.f32.mrb[13].mxu0  ;;  %1290 = vmatpush3.bf16.msra.mxu1 %v1564_v8  ;;  %v1276_v8 = vpack.c.bf16 %v681_v7, %v680_v6 }
 0x115   : > { %v1317_v46 = vpop.eup %1316  ;;  %v448_v47 = vadd.f32 %v1581_v12, %v447_v45  ;;  %1283 = vmatprep.subr.bf16.mxu1 %v1573_v11 }
 0x116   : > { %v1319_v48 = vpop.eup %1318  ;;  %1113 = vmatprep.mubr.f32.mxu1 %v1317_v46  ;;  %1277 = vmatprep.subr.bf16.mxu0 %v1276_v8 }
 0x117   : > { %1328 = vtanh.f32 %v448_v47  ;;  %v1071_v49 = vpop.f32.mrb[14].mxu0  ;;  %1114 = vmatmul.mubr.f32.gmra.mrb[6].mxu1 %v1319_v48  ;;  %1279 = vmatpush3.bf16.msra.mxu0 %v1276_v8 }
 0x118   : > { %1330 = vtanh.f32 %v453_v44  ;;  %v463_v50 = vadd.f32 %v1071_v49, %v1581_v12  ;;  %v457_v51 = vpop.f32.mrb[15].mxu0  ;;  %1291 = vmatpush3.bf16.msra.mxu1 %v1573_v11 }
 0x119   : > { %v1321_v52 = vpop.eup %1320  ;;  %v458_v53 = vadd.f32 %v1581_v12, %v457_v51  ;;  %1284 = vmatprep.subr.bf16.mxu1 %v1264_v63 }
 0x11a   : > { %v1323_v54 = vpop.eup %1322  ;;  %1116 = vmatprep.mubr.f32.mxu1 %v1321_v52 }
 0x11b   : > { %1332 = vtanh.f32 %v458_v53  ;;  %1117 = vmatmul.mubr.f32.gmra.mrb[8].mxu1 %v1323_v54 }
 0x11c   : > { %1334 = vtanh.f32 %v463_v50  ;;  %1292 = vmatpush3.bf16.msra.mxu1 %v1264_v63 }
 0x11d   : > { %v1325_v55 = vpop.eup %1324  ;;  %1285 = vmatprep.subr.bf16.mxu1 %v1268_v2 }
 0x11e   : > { %v1327_v56 = vpop.eup %1326  ;;  %1119 = vmatprep.mubr.f32.mxu1 %v1325_v55 }
 0x11f   : > { %1120 = vmatmul.mubr.f32.gmra.mrb[10].mxu1 %v1327_v56 }
 0x120   : > { %1293 = vmatpush3.bf16.msra.mxu1 %v1268_v2 }
 0x121   : > { %v1329_v57 = vpop.eup %1328  ;;  %1286 = vmatprep.subr.bf16.mxu1 %v1272_v5 }
 0x122   : > { %v1331_v58 = vpop.eup %1330  ;;  %1122 = vmatprep.mubr.f32.mxu1 %v1329_v57 }
 0x123   : > { %1123 = vmatmul.mubr.f32.gmra.mrb[12].mxu1 %v1331_v58  ;;  %v917_v58 = vld [vmem:[%s1683_s6] ss:$0 sm:$0xff] }
 0x124   : > { %1294 = vmatpush3.bf16.msra.mxu1 %v1272_v5 }
 0x125   : > { %v1333_v59 = vpop.eup %1332  ;;  %1287 = vmatprep.subr.bf16.mxu1 %v1276_v8 }
 0x126   : > { %v1335_v60 = vpop.eup %1334  ;;  %1125 = vmatprep.mubr.f32.mxu1 %v1333_v59 }
 0x127   : > { %1126 = vmatmul.mubr.f32.gmra.mrb[14].mxu1 %v1335_v60 }
 0x128   : > { %1295 = vmatpush3.bf16.msra.mxu1 %v1276_v8 }
 0x1de   : > { %v1106_v10 = vpop.f32.mrb[0].mxu1 }
 0x1df   : > { %v577_v11 = vadd.f32 %v1106_v10, %v1630_v9  ;;  %v571_v12 = vpop.f32.mrb[1].mxu1 }
 0x1e0   : > { %v572_v13 = vadd.f32 %v1630_v9, %v571_v12 }
 0x1e2   : > { %1336 = vtanh.f32 %v572_v13  ;;  %v1109_v14 = vpop.f32.mrb[2].mxu1 }
 0x1e3   : > { %1338 = vtanh.f32 %v577_v11  ;;  %v587_v15 = vadd.f32 %v1109_v14, %v1630_v9  ;;  %v581_v16 = vpop.f32.mrb[3].mxu1 }
 0x1e4   : > { %v582_v17 = vadd.f32 %v1630_v9, %v581_v16 }
 0x1e6   : > { %1340 = vtanh.f32 %v582_v17  ;;  %v1112_v18 = vpop.f32.mrb[4].mxu1 }
 0x1e7   : > { %1342 = vtanh.f32 %v587_v15  ;;  %v597_v19 = vadd.f32 %v1112_v18, %v1630_v9  ;;  %v591_v20 = vpop.f32.mrb[5].mxu1 }
 0x1e8   : > { %v592_v21 = vadd.f32 %v1630_v9, %v591_v20 }
 0x1ea   : > { %1344 = vtanh.f32 %v592_v21  ;;  %v1115_v22 = vpop.f32.mrb[6].mxu1 }
 0x1eb   : > { %1346 = vtanh.f32 %v597_v19  ;;  %v607_v23 = vadd.f32 %v1115_v22, %v1630_v9  ;;  %v601_v24 = vpop.f32.mrb[7].mxu1 }
 0x1ec   : > { %v1337_v25 = vpop.eup %1336  ;;  %v602_v26 = vadd.f32 %v1630_v9, %v601_v24 }
 0x1ed   : > { %v1339_v27 = vpop.eup %1338  ;;  %1160 = vmatprep.mubr.f32.mxu0 %v1337_v25 }
 0x1ee   : > { %1348 = vtanh.f32 %v602_v26  ;;  %v1118_v28 = vpop.f32.mrb[8].mxu1  ;;  %1161 = vmatmul.mubr.f32.vlgmr.msra.gmra.mrb[16].mxu0 %v1339_v27 }
 0x1ef   : > { %1350 = vtanh.f32 %v607_v23  ;;  %v617_v29 = vadd.f32 %v1118_v28, %v1630_v9  ;;  %v611_v30 = vpop.f32.mrb[9].mxu1 }
 0x1f0   : > { %v1341_v31 = vpop.eup %1340  ;;  %v612_v32 = vadd.f32 %v1630_v9, %v611_v30 }
 0x1f1   : > { %v1343_v33 = vpop.eup %1342  ;;  %1163 = vmatprep.mubr.f32.mxu0 %v1341_v31 }
 0x1f2   : > { %1352 = vtanh.f32 %v612_v32  ;;  %v1121_v34 = vpop.f32.mrb[10].mxu1  ;;  %1164 = vmatmul.mubr.f32.gmra.mrb[18].mxu0 %v1343_v33 }
 0x1f3   : > { %1354 = vtanh.f32 %v617_v29  ;;  %v627_v35 = vadd.f32 %v1121_v34, %v1630_v9  ;;  %v621_v36 = vpop.f32.mrb[11].mxu1 }
 0x1f4   : > { %v1345_v37 = vpop.eup %1344  ;;  %v622_v38 = vadd.f32 %v1630_v9, %v621_v36 }
 0x1f5   : > { %v1347_v39 = vpop.eup %1346  ;;  %1166 = vmatprep.mubr.f32.mxu0 %v1345_v37 }
 0x1f6   : > { %1356 = vtanh.f32 %v622_v38  ;;  %v1124_v40 = vpop.f32.mrb[12].mxu1  ;;  %1167 = vmatmul.mubr.f32.gmra.mrb[20].mxu0 %v1347_v39 }
 0x1f7   : > { %1358 = vtanh.f32 %v627_v35  ;;  %v637_v41 = vadd.f32 %v1124_v40, %v1630_v9  ;;  %v631_v42 = vpop.f32.mrb[13].mxu1 }
 0x1f8   : > { %v1349_v43 = vpop.eup %1348  ;;  %v632_v44 = vadd.f32 %v1630_v9, %v631_v42 }
 0x1f9   : > { %v1351_v45 = vpop.eup %1350  ;;  %1169 = vmatprep.mubr.f32.mxu0 %v1349_v43 }
 0x1fa   : > { %1360 = vtanh.f32 %v632_v44  ;;  %v1127_v46 = vpop.f32.mrb[14].mxu1  ;;  %1170 = vmatmul.mubr.f32.gmra.mrb[22].mxu0 %v1351_v45 }
 0x1fb   : > { %1362 = vtanh.f32 %v637_v41  ;;  %v647_v47 = vadd.f32 %v1127_v46, %v1630_v9  ;;  %v641_v48 = vpop.f32.mrb[15].mxu1 }
 0x1fc   : > { %v1353_v49 = vpop.eup %1352  ;;  %v642_v50 = vadd.f32 %v1630_v9, %v641_v48 }
 0x1fd   : > { %v1355_v51 = vpop.eup %1354  ;;  %1172 = vmatprep.mubr.f32.mxu1 %v1353_v49 }
 0x1fe   : > { %1364 = vtanh.f32 %v642_v50  ;;  %1173 = vmatmul.mubr.f32.vlgmr.msra.gmra.mrb[16].mxu1 %v1355_v51 }
 0x1ff   : > { %1366 = vtanh.f32 %v647_v47 }
 0x200   : > { %v1357_v52 = vpop.eup %1356 }
 0x201   : > { %v1359_v53 = vpop.eup %1358  ;;  %1175 = vmatprep.mubr.f32.mxu1 %v1357_v52 }
 0x202   : > { %1176 = vmatmul.mubr.f32.gmra.mrb[18].mxu1 %v1359_v53 }
 0x204   : > { %v1361_v54 = vpop.eup %1360 }
 0x205   : > { %v1363_v55 = vpop.eup %1362  ;;  %1178 = vmatprep.mubr.f32.mxu1 %v1361_v54 }
 0x206   : > { %1179 = vmatmul.mubr.f32.gmra.mrb[20].mxu1 %v1363_v55 }
 0x208   : > { %v1365_v56 = vpop.eup %1364 }
 0x209   : > { %v1367_v57 = vpop.eup %1366  ;;  %1181 = vmatprep.mubr.f32.mxu1 %v1365_v56 }
 0x20a   : > { %1182 = vmatmul.mubr.f32.gmra.mrb[22].mxu1 %v1367_v57 }
 0x2c1   : > { %v1162_v59 = vpop.f32.mrb[16].mxu0 }
 0x2c2   : > { %v761_v60 = vadd.f32 %v1162_v59, %v917_v58  ;;  %v755_v61 = vpop.f32.mrb[17].mxu0 }
 0x2c3   : > { %v756_v62 = vadd.f32 %v917_v58, %v755_v61 }
 0x2c4   : > { %835 = vst [vmem:[%s1656_s12 + $0x8] sm:$0xff] %v761_v60 }
 0x2c5   : > { %834 = vst [vmem:[%s1656_s12] sm:$0xff] %v756_v62  ;;  %v1165_v63 = vpop.f32.mrb[18].mxu0 }
 0x2c6   : > { %v771_v0 = vadd.f32 %v1165_v63, %v917_v58  ;;  %v765_v1 = vpop.f32.mrb[19].mxu0 }
 0x2c7   : > { %v766_v2 = vadd.f32 %v917_v58, %v765_v1 }
 0x2c8   : > { %837 = vst [vmem:[%s1656_s12 + $0x18] sm:$0xff] %v771_v0 }
 0x2c9   : > { %836 = vst [vmem:[%s1656_s12 + $0x10] sm:$0xff] %v766_v2  ;;  %v1168_v3 = vpop.f32.mrb[20].mxu0 }
 0x2ca   : > { %v781_v4 = vadd.f32 %v1168_v3, %v917_v58  ;;  %v775_v5 = vpop.f32.mrb[21].mxu0 }
 0x2cb   : > { %v776_v6 = vadd.f32 %v917_v58, %v775_v5 }
 0x2cc   : > { %839 = vst [vmem:[%s1656_s12 + $0x28] sm:$0xff] %v781_v4 }
 0x2cd   : > { %838 = vst [vmem:[%s1656_s12 + $0x20] sm:$0xff] %v776_v6  ;;  %v1171_v7 = vpop.f32.mrb[22].mxu0 }
 0x2ce   : > { %v791_v8 = vadd.f32 %v1171_v7, %v917_v58  ;;  %v785_v9 = vpop.f32.mrb[23].mxu0 }
 0x2cf   : > { %v786_v10 = vadd.f32 %v917_v58, %v785_v9 }
 0x2d0   : > { %841 = vst [vmem:[%s1656_s12 + $0x38] sm:$0xff] %v791_v8 }
 0x2d1   : > { %840 = vst [vmem:[%s1656_s12 + $0x30] sm:$0xff] %v786_v10  ;;  %v1174_v11 = vpop.f32.mrb[16].mxu1 }
 0x2d2   : > { %v801_v12 = vadd.f32 %v1174_v11, %v917_v58  ;;  %v795_v13 = vpop.f32.mrb[17].mxu1 }
 0x2d3   : > { %v796_v14 = vadd.f32 %v917_v58, %v795_v13 }
 0x2d4   : > { %843 = vst [vmem:[%s1656_s12 + $0x48] sm:$0xff] %v801_v12 }
 0x2d5   : > { %842 = vst [vmem:[%s1656_s12 + $0x40] sm:$0xff] %v796_v14  ;;  %v1177_v15 = vpop.f32.mrb[18].mxu1 }
 0x2d6   : > { %v811_v16 = vadd.f32 %v1177_v15, %v917_v58  ;;  %v805_v17 = vpop.f32.mrb[19].mxu1 }
 0x2d7   : > { %v806_v18 = vadd.f32 %v917_v58, %v805_v17 }
 0x2d8   : > { %845 = vst [vmem:[%s1656_s12 + $0x58] sm:$0xff] %v811_v16 }
 0x2d9   : > { %844 = vst [vmem:[%s1656_s12 + $0x50] sm:$0xff] %v806_v18  ;;  %v1180_v19 = vpop.f32.mrb[20].mxu1 }
 0x2da   : > { %v821_v20 = vadd.f32 %v1180_v19, %v917_v58  ;;  %v815_v21 = vpop.f32.mrb[21].mxu1 }
 0x2db   : > { %v816_v22 = vadd.f32 %v917_v58, %v815_v21 }
 0x2dc   : > { %847 = vst [vmem:[%s1656_s12 + $0x68] sm:$0xff] %v821_v20 }
 0x2dd   : > { %846 = vst [vmem:[%s1656_s12 + $0x60] sm:$0xff] %v816_v22  ;;  %v1183_v23 = vpop.f32.mrb[22].mxu1 }
 0x2de   : > { %v831_v24 = vadd.f32 %v1183_v23, %v917_v58  ;;  %v825_v25 = vpop.f32.mrb[23].mxu1 }
 0x2df   : > { %v826_v26 = vadd.f32 %v917_v58, %v825_v25 }
 0x2e0   : > { %849 = vst [vmem:[%s1656_s12 + $0x78] sm:$0xff] %v831_v24 }
 0x2e1   : > { %848 = vst [vmem:[%s1656_s12 + $0x70] sm:$0xff] %v826_v26 }
 0x2e2 PF: > { %s17_s24 = sadd.s32 1, %s1374_s24  }
 0x2e3   : > { %p14_p4 = scmp.ge.s32.totalorder %s17_s24, 4  }
 0x2e5   :  { %16 = sbr.rel (!%p14_p4) target bundleno = 1 (0x1), region = 78 }

</bundles_post_ra>
